<compile_context>
chip_gen: v7x
topology: tpu7x:2x2x1
jax: 0.10.0
libtpu: 0.0.40
codegen_flags: <defaults>
</compile_context>

<pallas_src>
import functools
import math

import jax
import jax.numpy as jnp
from jax import lax
from jax.experimental import pallas as pl
from jax.experimental.pallas import tpu as pltpu


def _pick_tile(n, candidates=(512, 256, 128)):
    """Largest candidate that evenly divides n, else the full extent n."""
    for t in candidates:
        if t < n and n % t == 0:
            return t
    return n


# ----------------------------------------------------------------------------
# Kernel 1a: dense sparsity measurement (used when U_part == L_K, no gather).
#   S = q @ K^T ;  M = max_{sampled}(S) - (S @ counts) / L_K
# ----------------------------------------------------------------------------
def _dense_measure_kernel(q_ref, k_ref, w_ref, bias_ref, m_ref):
    q = q_ref[0]                                    # (TQ, D)   bf16
    k = k_ref[0]                                    # (L_K, D)  bf16
    s = lax.dot_general(q, k, (((1,), (1,)), ((), ())),
                        preferred_element_type=jnp.float32)      # (TQ, L_K) f32
    m_max = jnp.max(s + bias_ref[...], axis=-1)     # masked max over sampled keys
    m_mean = jnp.sum(s * w_ref[...], axis=-1)       # multiplicity-weighted sum / L_K
    m_ref[...] = (m_max - m_mean)[None, None, :]


# ----------------------------------------------------------------------------
# Kernel 1b: sampled sparsity measurement (fallback when U_part < L_K).
# ----------------------------------------------------------------------------
def _sampled_measure_kernel(q_ref, ks_ref, m_ref, *, inv_L_K):
    q = q_ref[0]                                    # (TQ, D)      bf16
    ks = ks_ref[0]                                  # (U_part, D)  bf16
    s = lax.dot_general(q, ks, (((1,), (1,)), ((), ())),
                        preferred_element_type=jnp.float32)
    m_ref[...] = (jnp.max(s, axis=-1) - jnp.sum(s, axis=-1) * inv_L_K)[None, None, :]


# ----------------------------------------------------------------------------
# Kernel 2: reduced-query attention, flash-style online softmax over L_K tiles.
#   scores = Qr @ K^T  (Qr pre-scaled by 1/sqrt(d_k));  out = softmax(scores) @ V
# ----------------------------------------------------------------------------
def _reduced_attention_kernel(qr_ref, k_ref, v_ref, out_ref, scores_ref,
                              m_sc, l_sc, acc_sc):
    kk = pl.program_id(1)

    @pl.when(kk == 0)
    def _():
        m_sc[...] = jnp.full_like(m_sc, -jnp.inf)
        l_sc[...] = jnp.zeros_like(l_sc)
        acc_sc[...] = jnp.zeros_like(acc_sc)

    qr = qr_ref[0]                                  # (u_pad, D)  bf16 (pre-scaled)
    k = k_ref[0]                                    # (TK, D)     bf16
    v = v_ref[0]                                    # (TK, D_v)   bf16
    s = lax.dot_general(qr, k, (((1,), (1,)), ((), ())),
                        preferred_element_type=jnp.float32)      # (u_pad, TK)
    scores_ref[0] = s.astype(scores_ref.dtype)

    m_prev = m_sc[...]
    m_new = jnp.maximum(m_prev, jnp.max(s, axis=-1, keepdims=True))
    alpha = jnp.exp(m_prev - m_new)
    p = jnp.exp(s - m_new)                          # f32
    l_sc[...] = alpha * l_sc[...] + jnp.sum(p, axis=-1, keepdims=True)
    acc_sc[...] = alpha * acc_sc[...] + jnp.dot(
        p.astype(v.dtype), v, preferred_element_type=jnp.float32)
    m_sc[...] = m_new

    @pl.when(kk == pl.num_programs(1) - 1)
    def _():
        out_ref[0] = (acc_sc[...] * pl.reciprocal(l_sc[...], approx=True)
                      ).astype(out_ref.dtype)


# ----------------------------------------------------------------------------
# Kernel 3: fused residual-add + LayerNorm (gamma, beta, unbiased=False).
# ----------------------------------------------------------------------------
def _add_layernorm_kernel(x_ref, r_ref, g_ref, b_ref, o_ref, *, eps):
    y = x_ref[...] + r_ref[...]
    mean = jnp.mean(y, axis=-1, keepdims=True)
    yc = y - mean
    var = jnp.mean(yc * yc, axis=-1, keepdims=True)
    o_ref[...] = (g_ref[...] * (yc * lax.rsqrt(var + eps)) + b_ref[...]
                  ).astype(o_ref.dtype)


# ----------------------------------------------------------------------------
# Kernel 4: fused position-wise feed-forward (linear -> relu -> linear).
# ----------------------------------------------------------------------------
def _ffn_kernel(x_ref, w1_ref, b1_ref, w2_ref, b2_ref, o_ref):
    h = jnp.dot(x_ref[...], w1_ref[...],
                preferred_element_type=jnp.float32) + b1_ref[...]
    h = jnp.maximum(h, 0.0)
    o_ref[...] = (jnp.dot(h, w2_ref[...], preferred_element_type=jnp.float32)
                  + b2_ref[...]).astype(o_ref.dtype)


# ----------------------------------------------------------------------------
# ProbSparse attention wrapper.
# ----------------------------------------------------------------------------
def prob_sparse_attention(q, K, V, sample_key, sampling_factor=5,
                          scores_dtype=jnp.float32):
    B, L_Q, D = q.shape
    _, L_K, _ = K.shape
    D_v = V.shape[-1]

    log_L_K = int(math.ceil(math.log1p(L_K)))
    log_L_Q = int(math.ceil(math.log1p(L_Q)))
    U_part = min(sampling_factor * L_Q * log_L_K, L_K)
    u = min(sampling_factor * log_L_Q, L_Q)

    # torch.randint(0, L_K, (U_part,)) -> deterministic JAX PRNG (glue).
    index_sample = jax.random.randint(sample_key, (U_part,), 0, L_K)

    # bf16 MXU operands (halves DMA bytes), f32 accumulation everywhere.
    q_bf = q.astype(jnp.bfloat16)
    k_bf = K.astype(jnp.bfloat16)
    v_bf = V.astype(jnp.bfloat16)

    TQ = _pick_tile(L_Q)
    m_shape = jax.ShapeDtypeStruct((B, 1, L_Q), jnp.float32)

    if U_part == L_K:
        # Common (saturated) case: no HBM K_sample copy.  Scoring against a
        # with-replacement resample of K == scoring against K with a per-key
        # multiplicity weight (mean term) and presence mask (max term).
        counts = jnp.zeros((L_K,), jnp.float32).at[index_sample].add(1.0)
        weights = (counts / float(L_K)).reshape(1, L_K)
        mask_bias = jnp.where(counts > 0.0, 0.0, -1e30).astype(jnp.float32).reshape(1, L_K)
        M3 = pl.pallas_call(
            _dense_measure_kernel,
            out_shape=m_shape,
            grid=(B, L_Q // TQ),
            in_specs=[
                pl.BlockSpec((1, TQ, D), lambda b, i: (b, i, 0)),
                pl.BlockSpec((1, L_K, D), lambda b, i: (b, 0, 0)),
                pl.BlockSpec((1, L_K), lambda b, i: (0, 0)),
                pl.BlockSpec((1, L_K), lambda b, i: (0, 0)),
            ],
            out_specs=pl.BlockSpec((1, 1, TQ), lambda b, i: (b, 0, i)),
            compiler_params=pltpu.CompilerParams(
                dimension_semantics=("parallel", "parallel")),
        )(q_bf, k_bf, weights, mask_bias)
    else:
        # Rare (very long L_K) case: explicit K_sample gather fallback.
        # TODO(synk): move this gather in-kernel via PrefetchScalarGridSpec row DMA.
        K_sample = jnp.take(k_bf, index_sample, axis=1)       # (B, U_part, D)
        M3 = pl.pallas_call(
            functools.partial(_sampled_measure_kernel, inv_L_K=1.0 / L_K),
            out_shape=m_shape,
            grid=(B, L_Q // TQ),
            in_specs=[
                pl.BlockSpec((1, TQ, D), lambda b, i: (b, i, 0)),
                pl.BlockSpec((1, U_part, D), lambda b, i: (b, 0, 0)),
            ],
            out_specs=pl.BlockSpec((1, 1, TQ), lambda b, i: (b, 0, i)),
            compiler_params=pltpu.CompilerParams(
                dimension_semantics=("parallel", "parallel")),
        )(q_bf, K_sample)
    M = M3[:, 0, :]                                            # (B, L_Q)

    # topk(u, largest=False) as in the reference (u *smallest* measurements).
    _, M_top = jax.lax.top_k(-M, u)                            # (B, u)

    # Pad the reduced-query count to a multiple of 8 (aligned MXU rows /
    # unmasked stores); padded rows recompute query 0 and are sliced off.
    u_pad = max(8, ((u + 7) // 8) * 8)
    if u_pad != u:
        M_top_p = jnp.concatenate(
            [M_top, jnp.zeros((B, u_pad - u), M_top.dtype)], axis=1)
    else:
        M_top_p = M_top

    # Fold 1/sqrt(d_k) into the (u, D) queries, not the (u, L_K) scores.
    scale = 1.0 / math.sqrt(D)
    Q_reduce = (jnp.take_along_axis(q, M_top_p[:, :, None], axis=1) * scale
                ).astype(jnp.bfloat16)                         # (B, u_pad, D)

    TK = _pick_tile(L_K)
    attn_out, attn_scores = pl.pallas_call(
        _reduced_attention_kernel,
        out_shape=(
            jax.ShapeDtypeStruct((B, u_pad, D_v), jnp.float32),
            jax.ShapeDtypeStruct((B, u_pad, L_K), scores_dtype),
        ),
        grid=(B, L_K // TK),
        in_specs=[
            pl.BlockSpec((1, u_pad, D), lambda b, k: (b, 0, 0)),
            pl.BlockSpec((1, TK, D), lambda b, k: (b, k, 0)),
            pl.BlockSpec((1, TK, D_v), lambda b, k: (b, k, 0)),
        ],
        out_specs=(
            pl.BlockSpec((1, u_pad, D_v), lambda b, k: (b, 0, 0)),
            pl.BlockSpec((1, u_pad, TK), lambda b, k: (b, 0, k)),
        ),
        scratch_shapes=[
            pltpu.VMEM((u_pad, 1), jnp.float32),
            pltpu.VMEM((u_pad, 1), jnp.float32),
            pltpu.VMEM((u_pad, D_v), jnp.float32),
        ],
        compiler_params=pltpu.CompilerParams(
            dimension_semantics=("parallel", "arbitrary")),
    )(Q_reduce, k_bf, v_bf)

    return attn_out[:, :u, :], attn_scores[:, :u, :]


# ----------------------------------------------------------------------------
# EncoderLayer wrapper (projections / head split-concat / top-k are JAX glue).
# ----------------------------------------------------------------------------
def _split_heads(t, n_head):
    B, L, D = t.shape
    d_h = D // n_head
    return t.reshape(B, L, n_head, d_h).transpose(0, 2, 1, 3).reshape(B * n_head, L, d_h)


def _merge_heads(t, B, n_head):
    BH, u, d_h = t.shape
    return t.reshape(B, n_head, u, d_h).transpose(0, 2, 1, 3).reshape(B, u, n_head * d_h)


def add_layernorm(x, res, gamma, beta, eps=1e-12):
    B, L, D = x.shape
    R = B * L
    TR = _pick_tile(R)
    out = pl.pallas_call(
        functools.partial(_add_layernorm_kernel, eps=eps),
        out_shape=jax.ShapeDtypeStruct((R, D), jnp.float32),
        grid=(R // TR,),
        in_specs=[
            pl.BlockSpec((TR, D), lambda i: (i, 0)),
            pl.BlockSpec((TR, D), lambda i: (i, 0)),
            pl.BlockSpec((1, D), lambda i: (0, 0)),
            pl.BlockSpec((1, D), lambda i: (0, 0)),
        ],
        out_specs=pl.BlockSpec((TR, D), lambda i: (i, 0)),
        compiler_params=pltpu.CompilerParams(dimension_semantics=("parallel",)),
    )(x.reshape(R, D), res.reshape(R, D), gamma.reshape(1, D), beta.reshape(1, D))
    return out.reshape(B, L, D)


def feed_forward(x, w1, b1, w2, b2):
    B, L, D = x.shape
    H = w1.shape[1]
    R = B * L
    TR = _pick_tile(R)
    out = pl.pallas_call(
        _ffn_kernel,
        out_shape=jax.ShapeDtypeStruct((R, D), jnp.float32),
        grid=(R // TR,),
        in_specs=[
            pl.BlockSpec((TR, D), lambda i: (i, 0)),
            pl.BlockSpec((D, H), lambda i: (0, 0)),
            pl.BlockSpec((1, H), lambda i: (0, 0)),
            pl.BlockSpec((H, D), lambda i: (0, 0)),
            pl.BlockSpec((1, D), lambda i: (0, 0)),
        ],
        out_specs=pl.BlockSpec((TR, D), lambda i: (i, 0)),
        compiler_params=pltpu.CompilerParams(dimension_semantics=("parallel",)),
    )(x.reshape(R, D), w1, b1.reshape(1, H), w2, b2.reshape(1, D))
    return out.reshape(B, L, D)


def multi_head_attention(x, params, n_head, sample_key, sampling_factor=5):
    B, L, d_model = x.shape
    # Tiny (d_model x d_model) input projections: plain-JAX glue.
    q = x @ params["w_q"] + params["b_q"]
    k = x @ params["w_k"] + params["b_k"]
    v = x @ params["w_v"] + params["b_v"]
    qh, kh, vh = (_split_heads(t, n_head) for t in (q, k, v))
    # batch*heads is the leading "parallel" grid axis (>= 2 keeps both v7x TCs busy).
    out, _scores = prob_sparse_attention(
        qh, kh, vh, sample_key, sampling_factor=sampling_factor,
        scores_dtype=jnp.bfloat16)       # scores are discarded -> bf16 writeback
    out = _merge_heads(out, B, n_head)
    return out @ params["w_concat"] + params["b_concat"]


def encoder_layer_forward(x, params, *, n_head, sampling_factor=5,
                          sample_key, eps=1e-12):
    B, L, d_model = x.shape
    u = min(sampling_factor * int(math.ceil(math.log1p(L))), L)
    if u != L:
        raise ValueError(
            f"reference EncoderLayer only type-checks when u ({u}) == L ({L})")
    attn = multi_head_attention(x, params, n_head, sample_key, sampling_factor)
    # dropout1 / dropout2: identity (inference forward).
    x1 = add_layernorm(attn, x, params["ln1_g"], params["ln1_b"], eps)
    f = feed_forward(x1, params["ffn_w1"], params["ffn_b1"],
                     params["ffn_w2"], params["ffn_b2"])
    return add_layernorm(f, x1, params["ln2_g"], params["ln2_b"], eps)


def init_encoder_params(key, d_model, ffn_hidden):
    def linear(k, fan_in, fan_out):
        kw, kb = jax.random.split(k)
        bound = 1.0 / math.sqrt(fan_in)
        return (jax.random.uniform(kw, (fan_in, fan_out), jnp.float32, -bound, bound),
                jax.random.uniform(kb, (fan_out,), jnp.float32, -bound, bound))

    ks = jax.random.split(key, 6)
    w_q, b_q = linear(ks[0], d_model, d_model)
    w_k, b_k = linear(ks[1], d_model, d_model)
    w_v, b_v = linear(ks[2], d_model, d_model)
    w_c, b_c = linear(ks[3], d_model, d_model)
    w1, b1 = linear(ks[4], d_model, ffn_hidden)
    w2, b2 = linear(ks[5], ffn_hidden, d_model)
    return dict(
        w_q=w_q, b_q=b_q, w_k=w_k, b_k=b_k, w_v=w_v, b_v=b_v,
        w_concat=w_c, b_concat=b_c,
        ln1_g=jnp.ones((d_model,), jnp.float32),
        ln1_b=jnp.zeros((d_model,), jnp.float32),
        ffn_w1=w1, ffn_b1=b1, ffn_w2=w2, ffn_b2=b2,
        ln2_g=jnp.ones((d_model,), jnp.float32),
        ln2_b=jnp.zeros((d_model,), jnp.float32),
    )


# ----------------------------------------------------------------------------
# Plain-JAX references (same math; bf16 matmul operands mirrored so that the
# top-k selection and rounding points match the kernels).
# ----------------------------------------------------------------------------
def _reference_prob_sparse(q, K, V, index_sample, sampling_factor=5):
    B, L_Q, D = q.shape
    L_K = K.shape[1]
    u = min(sampling_factor * int(math.ceil(math.log1p(L_Q))), L_Q)
    qb, kb, vb = (t.astype(jnp.bfloat16) for t in (q, K, V))
    ks = jnp.take(kb, index_sample, axis=1)
    s = jnp.einsum("bqd,bkd->bqk", qb, ks, preferred_element_type=jnp.float32)
    M = jnp.max(s, axis=-1) - jnp.sum(s, axis=-1) / L_K
    _, M_top = jax.lax.top_k(-M, u)
    scale = 1.0 / math.sqrt(D)
    Qr = (jnp.take_along_axis(q, M_top[:, :, None], axis=1) * scale).astype(jnp.bfloat16)
    scores = jnp.einsum("bud,bkd->buk", Qr, kb, preferred_element_type=jnp.float32)
    # softmax(scores) @ V, reassociated as (exp(s-max) @ V) / sumexp — identical math.
    e = jnp.exp(scores - jnp.max(scores, axis=-1, keepdims=True))
    out = jnp.einsum("buk,bkd->bud", e.astype(jnp.bfloat16), vb,
                     preferred_element_type=jnp.float32)
    out = out / jnp.sum(e, axis=-1, keepdims=True)
    return out, scores


def _reference_layernorm(x, g, b, eps):
    mean = jnp.mean(x, axis=-1, keepdims=True)
    var = jnp.mean((x - mean) ** 2, axis=-1, keepdims=True)
    return g * (x - mean) / jnp.sqrt(var + eps) + b


def _reference_encoder_layer(x, params, index_sample, n_head,
                             sampling_factor=5, eps=1e-12):
    B, L, d_model = x.shape
    q = x @ params["w_q"] + params["b_q"]
    k = x @ params["w_k"] + params["b_k"]
    v = x @ params["w_v"] + params["b_v"]
    qh, kh, vh = (_split_heads(t, n_head) for t in (q, k, v))
    out, _ = _reference_prob_sparse(qh, kh, vh, index_sample, sampling_factor)
    attn = _merge_heads(out, B, n_head) @ params["w_concat"] + params["b_concat"]
    x1 = _reference_layernorm(attn + x, params["ln1_g"], params["ln1_b"], eps)
    f = (jnp.maximum(x1 @ params["ffn_w1"] + params["ffn_b1"], 0.0)
         @ params["ffn_w2"] + params["ffn_b2"])
    return _reference_layernorm(f + x1, params["ln2_g"], params["ln2_b"], eps)


if __name__ == "__main__":
    root = jax.random.PRNGKey(0)
    k_x, k_par, k_samp, k_q, k_k, k_v, k_samp2 = jax.random.split(root, 7)

    # ---- Test 1: full EncoderLayer forward (dense-measure path, u == L) ----
    B, L, d_model, n_head, ffn_hidden, sampling_factor = 2, 12, 32, 2, 128, 5
    x = jax.random.normal(k_x, (B, L, d_model), jnp.float32)
    params = init_encoder_params(k_par, d_model, ffn_hidden)

    y = encoder_layer_forward(x, params, n_head=n_head,
                              sampling_factor=sampling_factor, sample_key=k_samp)
    jax.block_until_ready(y)

    log_L_K = int(math.ceil(math.log1p(L)))
    U_part = min(sampling_factor * L * log_L_K, L)
    idx = jax.random.randint(k_samp, (U_part,), 0, L)
    y_ref = _reference_encoder_layer(x, params, idx, n_head, sampling_factor)
    assert y.shape == (B, L, d_model)
    assert jnp.allclose(y, y_ref, atol=5e-2, rtol=5e-2), \
        float(jnp.max(jnp.abs(y - y_ref)))

    # ---- Test 2: standalone ProbSparse attention, long L_K (sampled-measure
    #      fallback path, flash-style L_K tiling, padded u) ----
    B2, L_Q2, L_K2, D2 = 2, 32, 2048, 64
    q2 = jax.random.normal(k_q, (B2, L_Q2, D2), jnp.float32)
    K2 = jax.random.normal(k_k, (B2, L_K2, D2), jnp.float32)
    V2 = jax.random.normal(k_v, (B2, L_K2, D2), jnp.float32)
    out2, scores2 = prob_sparse_attention(q2, K2, V2, k_samp2,
                                          sampling_factor=sampling_factor)
    jax.block_until_ready((out2, scores2))

    log_L_K2 = int(math.ceil(math.log1p(L_K2)))
    U_part2 = min(sampling_factor * L_Q2 * log_L_K2, L_K2)
    idx2 = jax.random.randint(k_samp2, (U_part2,), 0, L_K2)
    ref_out2, ref_scores2 = _reference_prob_sparse(q2, K2, V2, idx2, sampling_factor)
    assert jnp.allclose(scores2, ref_scores2, atol=2e-2, rtol=2e-2), \
        float(jnp.max(jnp.abs(scores2 - ref_scores2)))
    assert jnp.allclose(out2, ref_out2, atol=2e-2, rtol=2e-2), \
        float(jnp.max(jnp.abs(out2 - ref_out2)))

    print("KERNEL_OK")
</pallas_src>

<mosaic_0001>
module attributes {stable_mosaic.version = 11 : i64} {
  func.func @_dense_measure_kernel(%arg0: i32, %arg1: i32, %arg2: memref<1x12x16xbf16, #tpu.memory_space<vmem>>, %arg3: memref<1x12x16xbf16, #tpu.memory_space<vmem>>, %arg4: memref<1x12xf32, #tpu.memory_space<vmem>>, %arg5: memref<1x12xf32, #tpu.memory_space<vmem>>, %arg6: memref<1x1x12xf32, #tpu.memory_space<vmem>>) attributes {dimension_semantics = [#tpu.dimension_semantics<parallel>, #tpu.dimension_semantics<parallel>], iteration_bounds = array<i64: 4, 1>, scalar_prefetch = 0 : i64, scratch_operands = 0 : i64, tpu.core_type = #tpu.core_type<tc>, window_params = [{transform_indices = @transform_0, window_bounds = array<i64: 1, 12, 16>}, {transform_indices = @transform_1, window_bounds = array<i64: 1, 12, 16>}, {pipeline_mode = #tpu.pipeline_mode<synchronous>, transform_indices = @transform_2, window_bounds = array<i64: 1, 12>}, {pipeline_mode = #tpu.pipeline_mode<synchronous>, transform_indices = @transform_3, window_bounds = array<i64: 1, 12>}, {transform_indices = @transform_4, window_bounds = array<i64: 1, 1, 12>}]} {
    %c0 = arith.constant 0 : index
    %c0_0 = arith.constant 0 : index
    %c0_1 = arith.constant 0 : index
    %0 = vector.load %arg2[%c0, %c0_0, %c0_1] : memref<1x12x16xbf16, #tpu.memory_space<vmem>>, vector<1x12x16xbf16>
    %1 = vector.shape_cast %0 : vector<1x12x16xbf16> to vector<12x16xbf16>
    %c0_2 = arith.constant 0 : index
    %c0_3 = arith.constant 0 : index
    %c0_4 = arith.constant 0 : index
    %2 = vector.load %arg3[%c0_2, %c0_3, %c0_4] : memref<1x12x16xbf16, #tpu.memory_space<vmem>>, vector<1x12x16xbf16>
    %3 = vector.shape_cast %2 : vector<1x12x16xbf16> to vector<12x16xbf16>
    %cst = arith.constant dense<0.000000e+00> : vector<12x12xf32>
    %4 = tpu.matmul %1, %3, %cst {dimension_numbers = #tpu.dot_dimension_numbers<[1], [1], [0], [0], [0, 0, 1, 0], [], []>} : vector<12x16xbf16>, vector<12x16xbf16>, vector<12x12xf32> -> vector<12x12xf32>
    %c0_5 = arith.constant 0 : index
    %c0_6 = arith.constant 0 : index
    %5 = vector.load %arg5[%c0_5, %c0_6] : memref<1x12xf32, #tpu.memory_space<vmem>>, vector<1x12xf32>
    %6 = vector.broadcast %5 : vector<1x12xf32> to vector<12x12xf32>
    %7 = arith.addf %4, %6 : vector<12x12xf32>
    %cst_7 = arith.constant dense<0xFF800000> : vector<12xf32>
    %8 = vector.multi_reduction <maximumf>, %7, %cst_7 [1] : vector<12x12xf32> to vector<12xf32>
    %c0_8 = arith.constant 0 : index
    %c0_9 = arith.constant 0 : index
    %9 = vector.load %arg4[%c0_8, %c0_9] : memref<1x12xf32, #tpu.memory_space<vmem>>, vector<1x12xf32>
    %10 = vector.broadcast %9 : vector<1x12xf32> to vector<12x12xf32>
    %11 = arith.mulf %4, %10 : vector<12x12xf32>
    %cst_10 = arith.constant dense<0.000000e+00> : vector<12xf32>
    %12 = vector.multi_reduction <add>, %11, %cst_10 [1] : vector<12x12xf32> to vector<12xf32>
    %13 = arith.subf %8, %12 : vector<12xf32>
    %14 = vector.shape_cast %13 : vector<12xf32> to vector<1x1x12xf32>
    %c0_11 = arith.constant 0 : index
    %c0_12 = arith.constant 0 : index
    %c0_13 = arith.constant 0 : index
    %15 = vector.load %arg6[%c0_11, %c0_12, %c0_13] : memref<1x1x12xf32, #tpu.memory_space<vmem>>, vector<1x1x12xf32>
    tpu.vector_store %arg6[%c0_11, %c0_12, %c0_13], %14 {strides = array<i32>} : memref<1x1x12xf32, #tpu.memory_space<vmem>>, vector<1x1x12xf32>,
    return
  }
  func.func @transform_0(%arg0: i32, %arg1: i32) -> (i32, i32, i32) {
    %c0_i32 = arith.constant 0 : i32
    %c0_i32_0 = arith.constant 0 : i32
    return %arg0, %arg1, %c0_i32 : i32, i32, i32
  }
  func.func @transform_1(%arg0: i32, %arg1: i32) -> (i32, i32, i32) {
    %c0_i32 = arith.constant 0 : i32
    %c0_i32_0 = arith.constant 0 : i32
    %c0_i32_1 = arith.constant 0 : i32
    return %arg0, %c0_i32, %c0_i32_0 : i32, i32, i32
  }
  func.func @transform_2(%arg0: i32, %arg1: i32) -> (i32, i32) {
    %c0_i32 = arith.constant 0 : i32
    %c0_i32_0 = arith.constant 0 : i32
    %c0_i32_1 = arith.constant 0 : i32
    return %c0_i32, %c0_i32_0 : i32, i32
  }
  func.func @transform_3(%arg0: i32, %arg1: i32) -> (i32, i32) {
    %c0_i32 = arith.constant 0 : i32
    %c0_i32_0 = arith.constant 0 : i32
    %c0_i32_1 = arith.constant 0 : i32
    return %c0_i32, %c0_i32_0 : i32, i32
  }
  func.func @transform_4(%arg0: i32, %arg1: i32) -> (i32, i32, i32) {
    %c0_i32 = arith.constant 0 : i32
    %c0_i32_0 = arith.constant 0 : i32
    return %arg0, %c0_i32, %arg1 : i32, i32, i32
  }
}

</mosaic_0001>

<bundles_post_ra>
// kernel: tpu_custom_call.1
= control target key start
LH: loop header
LB: loop body
LE: loop exit
PB: predicated region body
PF: predicated region fallthrough
CT: control target
= control target key end

     0   :  { %9 = vsyncpa [#allocation3], 0  ;;  %s771_s0 = inlined_call_operand.vmem [shape: bf16[4,12,16], index: 0, kind: input, shape index: {}]   ;;  %s772_s1 = inlined_call_operand.vmem [shape: bf16[4,12,16], index: 1, kind: input, shape index: {}]   ;;  %s773_s2 = inlined_call_operand.vmem [shape: f32[1,12], index: 2, kind: input, shape index: {}]   ;;  %s774_s3 = inlined_call_operand.vmem [shape: f32[1,12], index: 3, kind: input, shape index: {}]   ;;  %s775_s4 = inlined_call_operand.hbm [shape: f32[4,1,12], index: 4, kind: output, shape index: {}]  }
   0x1   :  { %11 = vsyncpa [#allocation3 + $0x1], 0  ;;  %s650_s15 = smov 0   ;;  %s652_s16 = smov 0  }
   0x2   :  { %s654_s17 = smov 0   ;;  %s656_s18 = smov 0  }
   0x3   :  { %s658_s19 = smov 0   ;;  %s660_s20 = smov 0  }
   0x4 LB: > { %s456_s21 = sadd.s32 4294967295, %s620_s20   ;;  %s457_s22 = sadd.s32 4294967294, %s620_s20   ;;  %s620_s20 = sphi %s660_s20, %s17_s20   ;;  %s616_s19 = sphi %s658_s19, %s782_s19   ;;  %s612_s18 = sphi %s656_s18, %s781_s18   ;;  %s608_s17 = sphi %s654_s17, %s780_s17   ;;  %s604_s16 = sphi %s652_s16, %s779_s16   ;;  %s600_s15 = sphi %s650_s15, %s778_s15  }
   0x5   : > { %s29_s23 = sadd.s32 1, %s616_s19  ;;  %s134_s24 = sadd.s32 1, %s608_s17 }
   0x6   : > { %p31_p0 = scmp.ge.s32.totalorder %s29_s23, 4  ;;  %p144_p1 = scmp.ne.s32.totalorder %s608_s17, %s604_s16 }
   0x7   : > { %p145_p2 = scmp.eq.s32.totalorder %s456_s21, 3  ;;  %p150_p3 = scmp.ne.s32.totalorder %s604_s16, %s600_s15 }
   0x8   : > { %s784_s23 = smov (%p31_p0, %s29_s23), 0  ;;  %p151_p5 = scmp.eq.s32.totalorder %s457_s22, 3 }
   0x9   : > { %p690_p4 = por %p145_p2, %p144_p1  ;;  %s129_s26 = ssub.s32 %s616_s19, %s784_s23 }
   0xa   : > { %p460_p6 = scmp.ge.s32.totalorder %s620_s20, 1  ;;  %p132_p7 = scmp.eq.s32.totalorder %s129_s26, 0 }
   0xb   : > { %p697_p8 = por %p151_p5, %p150_p3  ;;  %p196_p9 = scmp.lt.s32.totalorder %s620_s20, 5 }
   0xc   : > { %s703_s28 = scalar_select %p132_p7, %s608_s17, %s134_s24  }
   0xd   : > { %p197_p10 = pnand %p460_p6, %p196_p9 }
   0xe   : > { %p231_p11 = scmp.lt.s32.totalorder (!%p197_p10), %s612_s18, 3  ;;  %v622_v0 = vmov (!%p197_p10), 0.0   ;;  %vm623_vm0 = vmmov (!%p197_p10), 0   ;;  %vm260_vm1 = vcmask (!%p197_p10), 130048   ;;  %v468_v4 = vld [vmem:[%s774_s3] ss:$0 sm:$0xff] (!%p197_p10)  ;;  %v344_v18 = vlaneseq (!%p197_p10) }
   0xf   : > { %200 = sbr.rel (%p197_p10) target bundleno = 415 (0x19f), region = 36  ;;  %477 = vmatprep.subr.bf16.mxu0 (!%p197_p10), %v622_v0  ;;  %479 = vmatprep.mubr.msk.bf16.mxu0 (!%p197_p10), %vm623_vm0, %v622_v0  ;;  %v469_v5 = vld [vmem:[%s773_s2] ss:$0 sm:$0xff] (!%p197_p10)  ;;  %vm317_vm2 = vcmask (!%p197_p10), 97280   ;;  %vm321_vm3 = vcmask (!%p197_p10), 93184   ;;  %s228_s21 = sand.u32 (!%p197_p10), 1, %s604_s16  }
  0x10   : > { %v345_v19 = vand.u32 (!%p197_p10), 127, %v344_v18  ;;  %v347_v20 = vshrl.u32 (!%p197_p10), %v344_v18, 7  ;;  %s470_s22 = sshll.u32 (!%p197_p10), %s612_s18, 4  ;;  %s229_s24 = scalar_lea.vmem (!%p197_p10), [#allocation2], %s228_s21  ;;  %vm355_vm4 = vcmask (!%p197_p10), 130112   ;;  %vm358_vm5 = vcmask (!%p197_p10), 90112  }
  0x11   : > { %s374_s26 = sshll.u32 (!%p197_p10), %s229_s24, 4  ;;  %s724_s5 = scalar_lea.hbm (!%p197_p10), %s775_s4, %s470_s22  ;;  %s726_s26 = int_to_ptr.vmem [resolvable:$true] %s374_s26 }
  0x12   : > { %v350_v21 = vadd.s32 (!%p197_p10), 4294967288, %v345_v19  ;;  %v348_v24 = vsub.s32 (!%p197_p10), %v345_v19, %v347_v20  ;;  %s361_s6 = scalar_lea.sflag (!%p197_p10), [#allocation3], %s228_s21 }
  0x14   : > { %v353_v26 = vsub.s32 (!%p197_p10), %v350_v21, %v347_v20 }
  0x16   : > { %s232_s29 = scalar_select %p231_p11, %s612_s18, 3 }
  0x17   : > { %s542_s18 = scalar_lea.vmem %s726_s26, 16 }
  0x18   : > { %s473_s30 = sshll.u32 %s232_s29, 3  ;;  %p543_p12 = scmp.ne.s32.totalorder %s726_s26, %s542_s18 }
  0x19   : > { %s238_s7 = scalar_lea.vmem %s771_s0, %s473_s30  ;;  %s244_s10 = scalar_lea.vmem %s772_s1, %s473_s30 }
  0x1a   : > { %v540_v1 = vld [vmem:[%s244_s10] sm:$0x3f]   ;;  %p544_p13 = pnand %p543_p12, %p690_p4 }
  0x1b   : > { %v265_v2 = vsel %vm260_vm1, %v540_v1, 0  ;;  %v541_v3 = vld [vmem:[%s238_s7] sm:$0x3f]   ;;  %s624_s7 = smov [#allocation2]  }
  0x1c   : > { %478 = vmatpush3.bf16.xpose.msra.mxu0 %v265_v2  ;;  %p545_p0 = pneg %p544_p13  ;;  %s546_s8 = sshll.u32 %s624_s7, 4  ;;  %s547_s8 = int_to_ptr.vmem [resolvable:$false] %s546_s8 }
  0x1d   : > { %s548_s9 = scalar_lea.vmem %s547_s8, 32  ;;  %p549_p1 = scmp.lt.s32.totalorder %s726_s26, %s547_s8 }
  0x1e   : > { %p550_p2 = scmp.lt.s32.totalorder %s548_s9, %s542_s18 }
  0x20   : > { %p551_p3 = por %p550_p2, %p549_p1 }
  0x22   : > { %p552_p5 = pnand %p551_p3, %p545_p0 }
  0x23   : > { %480 = vmatmul.mubr.msk.bf16.vlgmr.msra.gmra.mrb[0].mxu0 %vm260_vm1, %v541_v3 }
  0xf6   : > { %v301_v6 = vpop.f32.mrb[0].mxu0 }
  0xf7   : > { %v481_v7 = vpop.f32.mrb[1].mxu0  ;;  %v332_v8 = vmul.f32 %v469_v5, %v301_v6  ;;  %v315_v9 = vadd.f32 %v468_v4, %v301_v6 }
  0xf8   : > { %v304_v10 = vpop.f32.mrb[2].mxu0 }
  0xf9   : > { %v316_v11 = vadd.f32 %v468_v4, %v304_v10  ;;  %v333_v12 = vmul.f32 %v469_v5, %v304_v10  ;;  %v482_v13 = vpop.f32.mrb[3].mxu0  ;;  %v334_v14 = vsel %vm317_vm2, %v332_v8, 0.0  ;;  %v318_v15 = vsel %vm317_vm2, %v315_v9, -inf }
  0xfa   : > { %335 = vadd.xlane.f32.xlu1 %v334_v14  ;;  %319 = vmax.xlane.f32.xlu0 %v318_v15 }
  0xfb   : > { %v337_v16 = vsel %vm321_vm3, %v333_v12, 0.0  ;;  %v322_v17 = vsel %vm321_vm3, %v316_v11, -inf }
  0xfe   : > { %338 = vadd.xlane.f32.xlu1 %v337_v16  ;;  %323 = vmax.xlane.f32.xlu0 %v322_v17 }
 0x187   : > { %v336_v22 = vpop.xlane.xlu1 %335  ;;  %v320_v23 = vpop.xlane.xlu0 %319 }
 0x188   : > { %v340_v25 = vsub.f32 %v320_v23, %v336_v22 }
 0x18a   : > { %v349_v30 = vrot.slane %v340_v25, %v348_v24 }
 0x18b   : > { %v339_v27 = vpop.xlane.xlu1 %338  ;;  %v324_v28 = vpop.xlane.xlu0 %323 }
 0x18c   : > { %v341_v29 = vsub.f32 %v324_v28, %v339_v27 }
 0x18e   : > { %v354_v31 = vrot.slane %v341_v29, %v353_v26 }
 0x190   : > { %v356_v32 = vsel %vm355_vm4, %v354_v31, %v349_v30 }
 0x191   : > { %359 = vst.msk [vmem:[%s229_s24] sm:$0x1] %vm358_vm5, %v356_v32 }
 0x192   : > { %555 = shalt.err (!%p552_p5)
}
 0x193   : > { %s556_s10 = scalar_lea.hbm %s724_s5, 16  ;;  %s560_s13 = scalar_lea.hbm %s775_s4, 64 }
 0x194   : > { %p557_p6 = scmp.ne.s32.totalorder %s724_s5, %s556_s10  ;;  %p561_p10 = scmp.lt.u32.totalorder %s724_s5, %s775_s4 }
 0x195   : > { %p562_p11 = scmp.lt.u32.totalorder %s560_s13, %s556_s10  ;;  %p564_p13 = scmp.lt.u32.totalorder %s556_s10, %s724_s5 }
 0x196   : > { %p558_p7 = pnand %p557_p6, %p690_p4 }
 0x197   : > { %p563_p12 = por %p562_p11, %p561_p10 }
 0x198   : > { %p559_p9 = pneg %p558_p7 }
 0x199   : > { %p565_p0 = por %p564_p13, %p563_p12 }
 0x19b   : > { %p566_p1 = pnand %p565_p0, %p559_p9 }
 0x19d   : > { %569 = shalt.err (!%p566_p1)
}
 0x19e   : > { %483 = dma.vmem_to_hbm [thread:$0]  (%p690_p4), %s726_s26, 16, %s724_s5, %s361_s6  }
 0x19f PF: > { %p489_p2 = scmp.ge.s32.totalorder %s620_s20, 2  ;;  %s386_s22 = sand.u32 1, %s600_s15  }
 0x1a0   : > { %s387_s24 = scalar_lea.sflag [#allocation3], %s386_s22 }
 0x1a1   : > { %p486_p3 = pnand %p489_p2, %p697_p8 }
 0x1a3   : > { %595 = dma.done.wait (!%p486_p3), %s387_s24, 16  }
 0x1a4   : > { %597 = vsyncadd (!%p486_p3), %s387_s24, 4294967280  ;;  %s17_s20 = sadd.s32 1, %s620_s20   ;;  %s778_s15 = smov %s604_s16 }
 0x1a5   : > { %p14_p5 = scmp.ge.s32.totalorder %s17_s20, 6   ;;  %s779_s16 = smov %s608_s17 }
 0x1a6   : > { %s780_s17 = smov %s703_s28  ;;  %s781_s18 = smov %s616_s19 }
 0x1a7   : > { %s782_s19 = smov %s784_s23  ;;  %16 = sbr.rel (!%p14_p5) target bundleno = 4 (0x4), region = 74 }
 0x1ae   :  { %391 = vsyncpa [#allocation3], 1 }
 0x1af   :  { %393 = vsyncpa [#allocation3 + $0x1], 1 }

</bundles_post_ra>
